<compile_context>
chip_gen: v6e
topology: v6e:2x2x1
jax: 0.10.0
libtpu: 0.0.40
codegen_flags: <defaults>
</compile_context>

<pallas_src>
import functools
import math

import jax
import jax.numpy as jnp
from jax.experimental import pallas as pl
from jax.experimental.pallas import tpu as pltpu


def _gelu_exact(x):
    # Matches torch.nn.functional.gelu (erf-based, non-approximate).
    return 0.5 * x * (1.0 + jax.lax.erf(x * (1.0 / math.sqrt(2.0))))


# ---------------------------------------------------------------------------
# Fused kernel: projections + gelu + linear attention + LayerNorm + out_proj.
# Grid = (N, nL). kv (block-diag masked, (E, E)) is computed once per batch
# at l == 0 and persists in scratch across the L tiles of that batch.
# ---------------------------------------------------------------------------
def _fused_norm_linear_attn_kernel(
        xq_ref, xk_ref, xv_ref,
        wq_ref, bq_ref, wk_ref, bk_ref, wv_ref, bv_ref,
        mask_ref, ln_g_ref, ln_b_ref, wo_ref, bo_ref,
        o_ref,
        kv_ref):
    @pl.when(pl.program_id(1) == 0)
    def _compute_kv():
        xk = xk_ref[0]                                    # (S, E)
        xv = xv_ref[0]                                    # (S, E)
        kh = _gelu_exact(
            jnp.dot(xk, wk_ref[...], preferred_element_type=jnp.float32)
            + bk_ref[...])
        vh = jnp.dot(xv, wv_ref[...], preferred_element_type=jnp.float32) \
            + bv_ref[...]
        # Full-width k^T @ v : (E, E), then mask to the per-head block diagonal.
        kv_full = jax.lax.dot_general(
            kh, vh, (((0,), (0,)), ((), ())),
            preferred_element_type=jnp.float32)
        kv_ref[...] = kv_full * mask_ref[...]

    xq = xq_ref[0]                                        # (TL, E)
    qh = _gelu_exact(
        jnp.dot(xq, wq_ref[...], preferred_element_type=jnp.float32)
        + bq_ref[...])

    # All heads at once: q @ block_diag(kv_h) : (TL, E), full MXU width.
    attn = jnp.dot(qh, kv_ref[...], preferred_element_type=jnp.float32)

    # LayerNorm (torch default eps = 1e-5), statistics in f32.
    mean = jnp.mean(attn, axis=-1, keepdims=True)
    xc = attn - mean
    var = jnp.mean(xc * xc, axis=-1, keepdims=True)
    y = xc * jax.lax.rsqrt(var + 1e-5) * ln_g_ref[...] + ln_b_ref[...]

    # out_proj (lane-dense (TL, E) store).
    o_ref[0] = jnp.dot(y, wo_ref[...], preferred_element_type=jnp.float32) \
        + bo_ref[...]


def _pick_l_tile(L, target=512):
    if L <= target:
        return L
    for t in range(target, 0, -1):
        if L % t == 0:
            return t
    return L


def norm_linear_attention(query, key, value, params, num_heads, l_tile=None):
    """query/key/value: (L, N, E) float32, torch axis convention."""
    L, N, E = query.shape
    S = key.shape[0]
    H = num_heads
    hd = E // H
    assert hd * H == E

    TL = _pick_l_tile(L) if l_tile is None else l_tile
    assert L % TL == 0
    nL = L // TL

    # Batch-major activations for the kernel.
    q_b = jnp.transpose(query, (1, 0, 2))    # (N, L, E)
    k_b = jnp.transpose(key, (1, 0, 2))      # (N, S, E)
    v_b = jnp.transpose(value, (1, 0, 2))    # (N, S, E)

    # Pre-transpose weights so the kernel does a plain x @ W (== x @ W_torch^T).
    wq_t = params["wq"].T                    # (E, E)
    wk_t = params["wk"].T
    wv_t = params["wv"].T
    wo_t = params["wo"].T
    bq = params["bq"].reshape(1, E)
    bk = params["bk"].reshape(1, E)
    bv = params["bv"].reshape(1, E)
    bo = params["bo"].reshape(1, E)
    ln_g = params["ln_g"].reshape(1, E)
    ln_b = params["ln_b"].reshape(1, E)

    # Block-diagonal head mask for the (E, E) kv matrix.
    idx = jnp.arange(E)
    head_mask = (idx[:, None] // hd == idx[None, :] // hd).astype(jnp.float32)

    resident = lambda b, l: (0, 0)           # weights / biases stay in VMEM

    out_nle = pl.pallas_call(
        _fused_norm_linear_attn_kernel,
        out_shape=jax.ShapeDtypeStruct((N, L, E), jnp.float32),
        grid_spec=pltpu.PrefetchScalarGridSpec(
            num_scalar_prefetch=0,
            grid=(N, nL),
            in_specs=[
                pl.BlockSpec((1, TL, E), lambda b, l: (b, l, 0)),   # query
                pl.BlockSpec((1, S, E), lambda b, l: (b, 0, 0)),    # key
                pl.BlockSpec((1, S, E), lambda b, l: (b, 0, 0)),    # value
                pl.BlockSpec((E, E), resident),                     # wq^T
                pl.BlockSpec((1, E), resident),                     # bq
                pl.BlockSpec((E, E), resident),                     # wk^T
                pl.BlockSpec((1, E), resident),                     # bk
                pl.BlockSpec((E, E), resident),                     # wv^T
                pl.BlockSpec((1, E), resident),                     # bv
                pl.BlockSpec((E, E), resident),                     # head mask
                pl.BlockSpec((1, E), resident),                     # ln gamma
                pl.BlockSpec((1, E), resident),                     # ln beta
                pl.BlockSpec((E, E), resident),                     # wo^T
                pl.BlockSpec((1, E), resident),                     # bo
            ],
            out_specs=pl.BlockSpec((1, TL, E), lambda b, l: (b, l, 0)),
            scratch_shapes=[pltpu.VMEM((E, E), jnp.float32)],       # masked kv
        ),
        compiler_params=pltpu.CompilerParams(
            dimension_semantics=("parallel", "arbitrary")),
    )(q_b, k_b, v_b,
      wq_t, bq, wk_t, bk, wv_t, bv,
      head_mask, ln_g, ln_b, wo_t, bo)

    # Single cheap layout change deferred to the very end: (N, L, E) -> (L, N, E)
    return jnp.transpose(out_nle, (1, 0, 2)), None


# ---------------------------------------------------------------------------
# Deterministic parameter init (shapes from the module __init__).
# ---------------------------------------------------------------------------
def init_params(key, embed_dim):
    E = embed_dim
    keys = jax.random.split(key, 8)

    def xavier_uniform(k, shape, gain=1.0):
        fan_in, fan_out = shape[1], shape[0]
        bound = gain * math.sqrt(6.0 / (fan_in + fan_out))
        return jax.random.uniform(k, shape, jnp.float32, -bound, bound)

    g = 1.0 / math.sqrt(2.0)        # reset_parameters(): xavier gain 1/sqrt(2)
    lin_bound = 1.0 / math.sqrt(E)  # default nn.Linear bias init
    return {
        "wq": xavier_uniform(keys[0], (E, E), g),
        "wk": xavier_uniform(keys[1], (E, E), g),
        "wv": xavier_uniform(keys[2], (E, E), g),
        "bq": jax.random.uniform(keys[3], (E,), jnp.float32, -lin_bound, lin_bound),
        "bk": jax.random.uniform(keys[4], (E,), jnp.float32, -lin_bound, lin_bound),
        "bv": jax.random.uniform(keys[5], (E,), jnp.float32, -lin_bound, lin_bound),
        "wo": xavier_uniform(keys[6], (E, E), 1.0),
        "bo": jnp.zeros((E,), jnp.float32),      # out_proj bias -> 0
        "ln_g": jnp.ones((E,), jnp.float32),
        "ln_b": jnp.zeros((E,), jnp.float32),
    }


# Pure-JAX reference (same math as the torch module, no Pallas).
def reference(query, key, value, params, num_heads):
    L, N, E = query.shape
    S = key.shape[0]
    hd = E // num_heads
    q = query @ params["wq"].T + params["bq"]
    k = key @ params["wk"].T + params["bk"]
    v = value @ params["wv"].T + params["bv"]
    q = jnp.transpose(q.reshape(L, N * num_heads, hd), (1, 0, 2))
    k = jnp.transpose(k.reshape(S, N * num_heads, hd), (1, 0, 2))
    v = jnp.transpose(v.reshape(S, N * num_heads, hd), (1, 0, 2))
    q = _gelu_exact(q)
    k = _gelu_exact(k)
    o1 = jnp.einsum("bsd,bse->bde", k, v)
    out = jnp.einsum("bld,bde->ble", q, o1)
    out = jnp.transpose(out, (1, 0, 2)).reshape(L, N, E)
    mean = jnp.mean(out, axis=-1, keepdims=True)
    var = jnp.mean((out - mean) ** 2, axis=-1, keepdims=True)
    out = (out - mean) * jax.lax.rsqrt(var + 1e-5) * params["ln_g"] + params["ln_b"]
    out = out @ params["wo"].T + params["bo"]
    return out


if __name__ == "__main__":
    embed_dim = 32
    num_heads = 4
    tgt_len = 8
    src_len = 8
    bsz = 2

    root = jax.random.PRNGKey(0)
    kp, kq, kk, kv = jax.random.split(root, 4)
    params = init_params(kp, embed_dim)

    query = jax.random.normal(kq, (tgt_len, bsz, embed_dim), jnp.float32)
    key = jax.random.normal(kk, (src_len, bsz, embed_dim), jnp.float32)
    value = jax.random.normal(kv, (src_len, bsz, embed_dim), jnp.float32)

    out, _ = norm_linear_attention(query, key, value, params, num_heads)
    out = jax.block_until_ready(out)

    ref = reference(query, key, value, params, num_heads)
    assert out.shape == (tgt_len, bsz, embed_dim)
    assert bool(jnp.allclose(out, ref, atol=1e-4, rtol=1e-4)), "mismatch vs reference"

    print("KERNEL_OK")
</pallas_src>

<mosaic_0001>
module attributes {stable_mosaic.version = 11 : i64} {
  func.func @_fused_norm_linear_attn_kernel(%arg0: i32, %arg1: i32, %arg2: memref<1x8x32xf32, #tpu.memory_space<vmem>>, %arg3: memref<1x8x32xf32, #tpu.memory_space<vmem>>, %arg4: memref<1x8x32xf32, #tpu.memory_space<vmem>>, %arg5: memref<32x32xf32, #tpu.memory_space<vmem>>, %arg6: memref<1x32xf32, #tpu.memory_space<vmem>>, %arg7: memref<32x32xf32, #tpu.memory_space<vmem>>, %arg8: memref<1x32xf32, #tpu.memory_space<vmem>>, %arg9: memref<32x32xf32, #tpu.memory_space<vmem>>, %arg10: memref<1x32xf32, #tpu.memory_space<vmem>>, %arg11: memref<32x32xf32, #tpu.memory_space<vmem>>, %arg12: memref<1x32xf32, #tpu.memory_space<vmem>>, %arg13: memref<1x32xf32, #tpu.memory_space<vmem>>, %arg14: memref<32x32xf32, #tpu.memory_space<vmem>>, %arg15: memref<1x32xf32, #tpu.memory_space<vmem>>, %arg16: memref<1x8x32xf32, #tpu.memory_space<vmem>>, %arg17: memref<32x32xf32, #tpu.memory_space<vmem>>) attributes {dimension_semantics = [#tpu.dimension_semantics<parallel>, #tpu.dimension_semantics<arbitrary>], iteration_bounds = array<i64: 2, 1>, scalar_prefetch = 0 : i64, scratch_operands = 1 : i64, tpu.core_type = #tpu.core_type<tc>, window_params = [{transform_indices = @transform_0, window_bounds = array<i64: 1, 8, 32>}, {transform_indices = @transform_1, window_bounds = array<i64: 1, 8, 32>}, {transform_indices = @transform_2, window_bounds = array<i64: 1, 8, 32>}, {pipeline_mode = #tpu.pipeline_mode<synchronous>, transform_indices = @transform_3, window_bounds = array<i64: 32, 32>}, {pipeline_mode = #tpu.pipeline_mode<synchronous>, transform_indices = @transform_4, window_bounds = array<i64: 1, 32>}, {pipeline_mode = #tpu.pipeline_mode<synchronous>, transform_indices = @transform_5, window_bounds = array<i64: 32, 32>}, {pipeline_mode = #tpu.pipeline_mode<synchronous>, transform_indices = @transform_6, window_bounds = array<i64: 1, 32>}, {pipeline_mode = #tpu.pipeline_mode<synchronous>, transform_indices = @transform_7, window_bounds = array<i64: 32, 32>}, {pipeline_mode = #tpu.pipeline_mode<synchronous>, transform_indices = @transform_8, window_bounds = array<i64: 1, 32>}, {pipeline_mode = #tpu.pipeline_mode<synchronous>, transform_indices = @transform_9, window_bounds = array<i64: 32, 32>}, {pipeline_mode = #tpu.pipeline_mode<synchronous>, transform_indices = @transform_10, window_bounds = array<i64: 1, 32>}, {pipeline_mode = #tpu.pipeline_mode<synchronous>, transform_indices = @transform_11, window_bounds = array<i64: 1, 32>}, {pipeline_mode = #tpu.pipeline_mode<synchronous>, transform_indices = @transform_12, window_bounds = array<i64: 32, 32>}, {pipeline_mode = #tpu.pipeline_mode<synchronous>, transform_indices = @transform_13, window_bounds = array<i64: 1, 32>}, {transform_indices = @transform_14, window_bounds = array<i64: 1, 8, 32>}]} {
    %c0_i32 = arith.constant 0 : i32
    %0 = arith.cmpi eq, %arg1, %c0_i32 : i32
    %1 = arith.extui %0 : i1 to i32
    %c0_i32_0 = arith.constant 0 : i32
    %2 = arith.cmpi ne, %1, %c0_i32_0 : i32
    scf.if %2 {
      %c0_30 = arith.constant 0 : index
      %c0_31 = arith.constant 0 : index
      %c0_32 = arith.constant 0 : index
      %50 = vector.load %arg3[%c0_30, %c0_31, %c0_32] : memref<1x8x32xf32, #tpu.memory_space<vmem>>, vector<1x8x32xf32>
      %51 = vector.shape_cast %50 : vector<1x8x32xf32> to vector<8x32xf32>
      %c0_33 = arith.constant 0 : index
      %c0_34 = arith.constant 0 : index
      %c0_35 = arith.constant 0 : index
      %52 = vector.load %arg4[%c0_33, %c0_34, %c0_35] : memref<1x8x32xf32, #tpu.memory_space<vmem>>, vector<1x8x32xf32>
      %53 = vector.shape_cast %52 : vector<1x8x32xf32> to vector<8x32xf32>
      %c0_36 = arith.constant 0 : index
      %c0_37 = arith.constant 0 : index
      %54 = vector.load %arg7[%c0_36, %c0_37] : memref<32x32xf32, #tpu.memory_space<vmem>>, vector<32x32xf32>
      %cst_38 = arith.constant dense<0.000000e+00> : vector<8x32xf32>
      %55 = tpu.matmul %51, %54, %cst_38 {dimension_numbers = #tpu.dot_dimension_numbers<[1], [0], [0], [1], [0, 0, 1, 1], [], []>} : vector<8x32xf32>, vector<32x32xf32>, vector<8x32xf32> -> vector<8x32xf32>
      %c0_39 = arith.constant 0 : index
      %c0_40 = arith.constant 0 : index
      %56 = vector.load %arg8[%c0_39, %c0_40] : memref<1x32xf32, #tpu.memory_space<vmem>>, vector<1x32xf32>
      %57 = vector.broadcast %56 : vector<1x32xf32> to vector<8x32xf32>
      %58 = arith.addf %55, %57 : vector<8x32xf32>
      %cst_41 = arith.constant 5.000000e-01 : f32
      %59 = vector.broadcast %cst_41 : f32 to vector<8x32xf32>
      %60 = arith.mulf %59, %58 : vector<8x32xf32>
      %cst_42 = arith.constant 0.707106769 : f32
      %61 = vector.broadcast %cst_42 : f32 to vector<8x32xf32>
      %62 = arith.mulf %58, %61 : vector<8x32xf32>
      %63 = math.erf %62 : vector<8x32xf32>
      %cst_43 = arith.constant 1.000000e+00 : f32
      %64 = vector.broadcast %cst_43 : f32 to vector<8x32xf32>
      %65 = arith.addf %64, %63 : vector<8x32xf32>
      %66 = arith.mulf %60, %65 : vector<8x32xf32>
      %c0_44 = arith.constant 0 : index
      %c0_45 = arith.constant 0 : index
      %67 = vector.load %arg9[%c0_44, %c0_45] : memref<32x32xf32, #tpu.memory_space<vmem>>, vector<32x32xf32>
      %cst_46 = arith.constant dense<0.000000e+00> : vector<8x32xf32>
      %68 = tpu.matmul %53, %67, %cst_46 {dimension_numbers = #tpu.dot_dimension_numbers<[1], [0], [0], [1], [0, 0, 1, 1], [], []>} : vector<8x32xf32>, vector<32x32xf32>, vector<8x32xf32> -> vector<8x32xf32>
      %c0_47 = arith.constant 0 : index
      %c0_48 = arith.constant 0 : index
      %69 = vector.load %arg10[%c0_47, %c0_48] : memref<1x32xf32, #tpu.memory_space<vmem>>, vector<1x32xf32>
      %70 = vector.broadcast %69 : vector<1x32xf32> to vector<8x32xf32>
      %71 = arith.addf %68, %70 : vector<8x32xf32>
      %cst_49 = arith.constant dense<0.000000e+00> : vector<32x32xf32>
      %72 = tpu.matmul %66, %71, %cst_49 {dimension_numbers = #tpu.dot_dimension_numbers<[0], [0], [1], [1], [0, 1, 1, 1], [], []>} : vector<8x32xf32>, vector<8x32xf32>, vector<32x32xf32> -> vector<32x32xf32>
      %c0_50 = arith.constant 0 : index
      %c0_51 = arith.constant 0 : index
      %73 = vector.load %arg11[%c0_50, %c0_51] : memref<32x32xf32, #tpu.memory_space<vmem>>, vector<32x32xf32>
      %74 = arith.mulf %72, %73 : vector<32x32xf32>
      %c0_52 = arith.constant 0 : index
      %c0_53 = arith.constant 0 : index
      %75 = vector.load %arg17[%c0_52, %c0_53] : memref<32x32xf32, #tpu.memory_space<vmem>>, vector<32x32xf32>
      tpu.vector_store %arg17[%c0_52, %c0_53], %74 {strides = array<i32>} : memref<32x32xf32, #tpu.memory_space<vmem>>, vector<32x32xf32>,
    } else {
    }
    %c0 = arith.constant 0 : index
    %c0_1 = arith.constant 0 : index
    %c0_2 = arith.constant 0 : index
    %3 = vector.load %arg2[%c0, %c0_1, %c0_2] : memref<1x8x32xf32, #tpu.memory_space<vmem>>, vector<1x8x32xf32>
    %4 = vector.shape_cast %3 : vector<1x8x32xf32> to vector<8x32xf32>
    %c0_3 = arith.constant 0 : index
    %c0_4 = arith.constant 0 : index
    %5 = vector.load %arg5[%c0_3, %c0_4] : memref<32x32xf32, #tpu.memory_space<vmem>>, vector<32x32xf32>
    %cst = arith.constant dense<0.000000e+00> : vector<8x32xf32>
    %6 = tpu.matmul %4, %5, %cst {dimension_numbers = #tpu.dot_dimension_numbers<[1], [0], [0], [1], [0, 0, 1, 1], [], []>} : vector<8x32xf32>, vector<32x32xf32>, vector<8x32xf32> -> vector<8x32xf32>
    %c0_5 = arith.constant 0 : index
    %c0_6 = arith.constant 0 : index
    %7 = vector.load %arg6[%c0_5, %c0_6] : memref<1x32xf32, #tpu.memory_space<vmem>>, vector<1x32xf32>
    %8 = vector.broadcast %7 : vector<1x32xf32> to vector<8x32xf32>
    %9 = arith.addf %6, %8 : vector<8x32xf32>
    %cst_7 = arith.constant 5.000000e-01 : f32
    %10 = vector.broadcast %cst_7 : f32 to vector<8x32xf32>
    %11 = arith.mulf %10, %9 : vector<8x32xf32>
    %cst_8 = arith.constant 0.707106769 : f32
    %12 = vector.broadcast %cst_8 : f32 to vector<8x32xf32>
    %13 = arith.mulf %9, %12 : vector<8x32xf32>
    %14 = math.erf %13 : vector<8x32xf32>
    %cst_9 = arith.constant 1.000000e+00 : f32
    %15 = vector.broadcast %cst_9 : f32 to vector<8x32xf32>
    %16 = arith.addf %15, %14 : vector<8x32xf32>
    %17 = arith.mulf %11, %16 : vector<8x32xf32>
    %c0_10 = arith.constant 0 : index
    %c0_11 = arith.constant 0 : index
    %18 = vector.load %arg17[%c0_10, %c0_11] : memref<32x32xf32, #tpu.memory_space<vmem>>, vector<32x32xf32>
    %cst_12 = arith.constant dense<0.000000e+00> : vector<8x32xf32>
    %19 = tpu.matmul %17, %18, %cst_12 {dimension_numbers = #tpu.dot_dimension_numbers<[1], [0], [0], [1], [0, 0, 1, 1], [], []>} : vector<8x32xf32>, vector<32x32xf32>, vector<8x32xf32> -> vector<8x32xf32>
    %cst_13 = arith.constant dense<0.000000e+00> : vector<8xf32>
    %20 = vector.multi_reduction <add>, %19, %cst_13 [1] : vector<8x32xf32> to vector<8xf32>
    %21 = vector.shape_cast %20 : vector<8xf32> to vector<8x1xf32>
    %cst_14 = arith.constant 3.200000e+01 : f32
    %22 = vector.broadcast %cst_14 : f32 to vector<8x1xf32>
    %23 = arith.divf %21, %22 : vector<8x1xf32>
    %24 = vector.broadcast %23 : vector<8x1xf32> to vector<8x32xf32>
    %25 = arith.subf %19, %24 : vector<8x32xf32>
    %26 = arith.mulf %25, %25 : vector<8x32xf32>
    %cst_15 = arith.constant dense<0.000000e+00> : vector<8xf32>
    %27 = vector.multi_reduction <add>, %26, %cst_15 [1] : vector<8x32xf32> to vector<8xf32>
    %28 = vector.shape_cast %27 : vector<8xf32> to vector<8x1xf32>
    %cst_16 = arith.constant 3.200000e+01 : f32
    %29 = vector.broadcast %cst_16 : f32 to vector<8x1xf32>
    %30 = arith.divf %28, %29 : vector<8x1xf32>
    %cst_17 = arith.constant 9.99999974E-6 : f32
    %31 = vector.broadcast %cst_17 : f32 to vector<8x1xf32>
    %32 = arith.addf %30, %31 : vector<8x1xf32>
    %33 = math.rsqrt %32 : vector<8x1xf32>
    %34 = vector.broadcast %33 : vector<8x1xf32> to vector<8x32xf32>
    %35 = arith.mulf %25, %34 : vector<8x32xf32>
    %c0_18 = arith.constant 0 : index
    %c0_19 = arith.constant 0 : index
    %36 = vector.load %arg12[%c0_18, %c0_19] : memref<1x32xf32, #tpu.memory_space<vmem>>, vector<1x32xf32>
    %37 = vector.broadcast %36 : vector<1x32xf32> to vector<8x32xf32>
    %38 = arith.mulf %35, %37 : vector<8x32xf32>
    %c0_20 = arith.constant 0 : index
    %c0_21 = arith.constant 0 : index
    %39 = vector.load %arg13[%c0_20, %c0_21] : memref<1x32xf32, #tpu.memory_space<vmem>>, vector<1x32xf32>
    %40 = vector.broadcast %39 : vector<1x32xf32> to vector<8x32xf32>
    %41 = arith.addf %38, %40 : vector<8x32xf32>
    %c0_22 = arith.constant 0 : index
    %c0_23 = arith.constant 0 : index
    %42 = vector.load %arg14[%c0_22, %c0_23] : memref<32x32xf32, #tpu.memory_space<vmem>>, vector<32x32xf32>
    %cst_24 = arith.constant dense<0.000000e+00> : vector<8x32xf32>
    %43 = tpu.matmul %41, %42, %cst_24 {dimension_numbers = #tpu.dot_dimension_numbers<[1], [0], [0], [1], [0, 0, 1, 1], [], []>} : vector<8x32xf32>, vector<32x32xf32>, vector<8x32xf32> -> vector<8x32xf32>
    %c0_25 = arith.constant 0 : index
    %c0_26 = arith.constant 0 : index
    %44 = vector.load %arg15[%c0_25, %c0_26] : memref<1x32xf32, #tpu.memory_space<vmem>>, vector<1x32xf32>
    %45 = vector.broadcast %44 : vector<1x32xf32> to vector<8x32xf32>
    %46 = arith.addf %43, %45 : vector<8x32xf32>
    %c0_27 = arith.constant 0 : index
    %c0_28 = arith.constant 0 : index
    %c0_29 = arith.constant 0 : index
    %47 = vector.load %arg16[%c0_27, %c0_28, %c0_29] : memref<1x8x32xf32, #tpu.memory_space<vmem>>, vector<1x8x32xf32>
    %48 = vector.shape_cast %47 : vector<1x8x32xf32> to vector<8x32xf32>
    %49 = vector.shape_cast %46 : vector<8x32xf32> to vector<1x8x32xf32>
    tpu.vector_store %arg16[%c0_27, %c0_28, %c0_29], %49 {strides = array<i32>} : memref<1x8x32xf32, #tpu.memory_space<vmem>>, vector<1x8x32xf32>,
    return
  }
  func.func @transform_0(%arg0: i32, %arg1: i32) -> (i32, i32, i32) {
    %c0_i32 = arith.constant 0 : i32
    %c0_i32_0 = arith.constant 0 : i32
    return %arg0, %arg1, %c0_i32 : i32, i32, i32
  }
  func.func @transform_1(%arg0: i32, %arg1: i32) -> (i32, i32, i32) {
    %c0_i32 = arith.constant 0 : i32
    %c0_i32_0 = arith.constant 0 : i32
    %c0_i32_1 = arith.constant 0 : i32
    return %arg0, %c0_i32, %c0_i32_0 : i32, i32, i32
  }
  func.func @transform_2(%arg0: i32, %arg1: i32) -> (i32, i32, i32) {
    %c0_i32 = arith.constant 0 : i32
    %c0_i32_0 = arith.constant 0 : i32
    %c0_i32_1 = arith.constant 0 : i32
    return %arg0, %c0_i32, %c0_i32_0 : i32, i32, i32
  }
  func.func @transform_3(%arg0: i32, %arg1: i32) -> (i32, i32) {
    %c0_i32 = arith.constant 0 : i32
    %c0_i32_0 = arith.constant 0 : i32
    %c0_i32_1 = arith.constant 0 : i32
    return %c0_i32, %c0_i32_0 : i32, i32
  }
  func.func @transform_4(%arg0: i32, %arg1: i32) -> (i32, i32) {
    %c0_i32 = arith.constant 0 : i32
    %c0_i32_0 = arith.constant 0 : i32
    %c0_i32_1 = arith.constant 0 : i32
    return %c0_i32, %c0_i32_0 : i32, i32
  }
  func.func @transform_5(%arg0: i32, %arg1: i32) -> (i32, i32) {
    %c0_i32 = arith.constant 0 : i32
    %c0_i32_0 = arith.constant 0 : i32
    %c0_i32_1 = arith.constant 0 : i32
    return %c0_i32, %c0_i32_0 : i32, i32
  }
  func.func @transform_6(%arg0: i32, %arg1: i32) -> (i32, i32) {
    %c0_i32 = arith.constant 0 : i32
    %c0_i32_0 = arith.constant 0 : i32
    %c0_i32_1 = arith.constant 0 : i32
    return %c0_i32, %c0_i32_0 : i32, i32
  }
  func.func @transform_7(%arg0: i32, %arg1: i32) -> (i32, i32) {
    %c0_i32 = arith.constant 0 : i32
    %c0_i32_0 = arith.constant 0 : i32
    %c0_i32_1 = arith.constant 0 : i32
    return %c0_i32, %c0_i32_0 : i32, i32
  }
  func.func @transform_8(%arg0: i32, %arg1: i32) -> (i32, i32) {
    %c0_i32 = arith.constant 0 : i32
    %c0_i32_0 = arith.constant 0 : i32
    %c0_i32_1 = arith.constant 0 : i32
    return %c0_i32, %c0_i32_0 : i32, i32
  }
  func.func @transform_9(%arg0: i32, %arg1: i32) -> (i32, i32) {
    %c0_i32 = arith.constant 0 : i32
    %c0_i32_0 = arith.constant 0 : i32
    %c0_i32_1 = arith.constant 0 : i32
    return %c0_i32, %c0_i32_0 : i32, i32
  }
  func.func @transform_10(%arg0: i32, %arg1: i32) -> (i32, i32) {
    %c0_i32 = arith.constant 0 : i32
    %c0_i32_0 = arith.constant 0 : i32
    %c0_i32_1 = arith.constant 0 : i32
    return %c0_i32, %c0_i32_0 : i32, i32
  }
  func.func @transform_11(%arg0: i32, %arg1: i32) -> (i32, i32) {
    %c0_i32 = arith.constant 0 : i32
    %c0_i32_0 = arith.constant 0 : i32
    %c0_i32_1 = arith.constant 0 : i32
    return %c0_i32, %c0_i32_0 : i32, i32
  }
  func.func @transform_12(%arg0: i32, %arg1: i32) -> (i32, i32) {
    %c0_i32 = arith.constant 0 : i32
    %c0_i32_0 = arith.constant 0 : i32
    %c0_i32_1 = arith.constant 0 : i32
    return %c0_i32, %c0_i32_0 : i32, i32
  }
  func.func @transform_13(%arg0: i32, %arg1: i32) -> (i32, i32) {
    %c0_i32 = arith.constant 0 : i32
    %c0_i32_0 = arith.constant 0 : i32
    %c0_i32_1 = arith.constant 0 : i32
    return %c0_i32, %c0_i32_0 : i32, i32
  }
  func.func @transform_14(%arg0: i32, %arg1: i32) -> (i32, i32, i32) {
    %c0_i32 = arith.constant 0 : i32
    %c0_i32_0 = arith.constant 0 : i32
    return %arg0, %arg1, %c0_i32 : i32, i32, i32
  }
}

</mosaic_0001>

<bundles_post_ra>
// kernel: tpu_custom_call.1
= control target key start
LH: loop header
LB: loop body
LE: loop exit
PB: predicated region body
PF: predicated region fallthrough
CT: control target
= control target key end

     0   :  { %s2444_s0 = inlined_call_operand.hbm [shape: f32[2,8,32], index: 0, kind: input, shape index: {}]   ;;  %s2445_s1 = inlined_call_operand.hbm [shape: f32[2,8,32], index: 1, kind: input, shape index: {}]   ;;  %s2446_s2 = inlined_call_operand.hbm [shape: f32[2,8,32], index: 2, kind: input, shape index: {}]   ;;  %s2447_s3 = inlined_call_operand.hbm [shape: f32[32,32], index: 3, kind: input, shape index: {}]   ;;  %s2448_s4 = inlined_call_operand.vmem [shape: f32[1,32], index: 4, kind: input, shape index: {}]   ;;  %s2449_s5 = inlined_call_operand.hbm [shape: f32[32,32], index: 5, kind: input, shape index: {}]   ;;  %s2450_s6 = inlined_call_operand.vmem [shape: f32[1,32], index: 6, kind: input, shape index: {}]   ;;  %s2451_s7 = inlined_call_operand.hbm [shape: f32[32,32], index: 7, kind: input, shape index: {}]   ;;  %s2452_s8 = inlined_call_operand.vmem [shape: f32[1,32], index: 8, kind: input, shape index: {}]   ;;  %s2453_s9 = inlined_call_operand.hbm [shape: f32[32,32], index: 9, kind: input, shape index: {}]   ;;  %s2454_s10 = inlined_call_operand.vmem [shape: f32[1,32], index: 10, kind: input, shape index: {}]   ;;  %s2455_s11 = inlined_call_operand.vmem [shape: f32[1,32], index: 11, kind: input, shape index: {}]   ;;  %s2456_s12 = inlined_call_operand.hbm [shape: f32[32,32], index: 12, kind: input, shape index: {}]   ;;  %s2457_s13 = inlined_call_operand.vmem [shape: f32[1,32], index: 13, kind: input, shape index: {}]   ;;  %s2458_s14 = inlined_call_operand.hbm [shape: f32[2,8,32], index: 14, kind: output, shape index: {}]  }
   0x1   :  { %2477 = sst [smem:[#allocation31_spill]] %s2445_s1 }
   0x2   :  { %2478 = sst [smem:[#allocation32_spill]] %s2447_s3 }
   0x3   :  { %2479 = sst [smem:[#allocation33_spill]] %s2449_s5 }
   0x4   :  { %2480 = sst [smem:[#allocation34_spill]] %s2451_s7 }
   0x5   :  { %2481 = sst [smem:[#allocation35_spill]] %s2454_s10 }
   0x6   :  { %2482 = sst [smem:[#allocation36_spill]] %s2455_s11 }
   0x7   :  { %2483 = sst [smem:[#allocation37_spill]] %s2457_s13 }
   0x8   :  { %2484 = sst [smem:[#allocation38_spill]] %s2458_s14 }
   0x9   :  { %19 = vsyncpa [#allocation4], 0 }
   0xa   :  { %21 = vsyncpa [#allocation4 + $0x1], 0 }
   0xb   :  { %22 = vsyncpa [#allocation7], 0 }
   0xc   :  { %24 = vsyncpa [#allocation7 + $0x1], 0 }
   0xd   :  { %25 = vsyncpa [#allocation10], 0 }
   0xe   :  { %26 = vsyncpa [#allocation13], 0 }
   0xf   :  { %27 = vsyncpa [#allocation16], 0 }
  0x10   :  { %28 = vsyncpa [#allocation5], 0 }
  0x11   :  { %30 = vsyncpa [#allocation5 + $0x1], 0  ;;  %s2105_s29 = smov 0   ;;  %s2107_s30 = smov 0  }
  0x12   :  { %s2109_s15 = smov 0   ;;  %s2111_s16 = smov 0  }
  0x13   :  { %s2113_s17 = smov 0   ;;  %s2115_s18 = smov 0  }
  0x14 LB: > { %2485 = sst [smem:[#allocation24_spill]] %s1995_s29  ;;  %s2136_s19 = sadd.s32 4294967295, %s2015_s18   ;;  %s2015_s18 = sphi %s2115_s18, %s36_s18   ;;  %s2011_s17 = sphi %s2113_s17, %s2530_s17   ;;  %s2007_s16 = sphi %s2111_s16, %s2529_s16   ;;  %s2003_s15 = sphi %s2109_s15, %s2533_s15   ;;  %s1999_s30 = sphi %s2107_s30, %s2532_s30   ;;  %s1995_s29 = sphi %s2105_s29, %s2531_s29  }
  0x15   : > { %2486 = sst [smem:[#allocation25_spill]] %s2011_s17  ;;  %p1437_p0 = scmp.ge.s32.totalorder %s2015_s18, 1 }
  0x16   : > { %2487 = sst [smem:[#allocation26_spill]] %s2015_s18  ;;  %p2473_p1 = scmp.eq.s32.totalorder %s2136_s19, 0 }
  0x17   : > { %p392_p2 = scmp.lt.s32.totalorder %s2015_s18, 3  ;;  %s2017_s21 = smov [#allocation9]  }
  0x18   : > { %s404_s22 = sshll.u32 %s2017_s21, 4  ;;  %s2018_s24 = smov [#allocation12]   ;;  %s405_s22 = int_to_ptr.vmem [resolvable:$true] %s404_s22 }
  0x19   : > { %p2141_p3 = pnand %p1437_p0, %p392_p2  ;;  %s436_s25 = sshll.u32 %s2018_s24, 4  ;;  %s437_s25 = int_to_ptr.vmem [resolvable:$true] %s436_s25 }
  0x1a   : > { %s1716_s27 = scalar_lea.vmem %s405_s22, 512  ;;  %p1724_p11 = scmp.lt.s32.totalorder %s405_s22, %s405_s22 }
  0x1b   : > { %p1600_p4 = pneg %p2141_p3  ;;  %p1717_p8 = scmp.ne.s32.totalorder %s405_s22, %s1716_s27 }
  0x1c   : > { %p1725_p12 = scmp.lt.s32.totalorder %s1716_s27, %s1716_s27 }
  0x1d   : > { %p2150_p6 = pnand %p1600_p4, %p2473_p1 }
  0x1e   : > { %p1726_p13 = por %p1725_p12, %p1724_p11 }
  0x1f   : > { %p2156_p7 = pneg %p2150_p6 }
  0x21   : > { %p1719_p9 = pnand %p1717_p8, %p2156_p7 }
  0x23   : > { %p1720_p10 = pneg %p1719_p9 }
  0x25   : > { %p1727_p0 = pnand %p1726_p13, %p1720_p10 }
  0x27   : > { %1730 = shalt.err (!%p1727_p0)
}
  0x28   : > { %s2460_s28 = smov 128   ;;  %s2462_s21 = smov 8  }
  0x29   : > { %s2491_s3 = sld [smem:[#allocation32_spill]]  ;;  %s1742_s13 = scalar_lea.vmem %s437_s25, 512 }
  0x2a   : > { %p1743_p2 = scmp.ne.s32.totalorder %s437_s25, %s1742_s13  ;;  %p1750_p9 = scmp.lt.s32.totalorder %s437_s25, %s437_s25 }
  0x2b   : > { %p1751_p10 = scmp.lt.s32.totalorder %s1742_s13, %s1742_s13 }
  0x2c   : > { %p1745_p4 = pnand %p1743_p2, %p2156_p7 }
  0x2d   : > { %p1752_p11 = por %p1751_p10, %p1750_p9 }
  0x2e   : > { %p1746_p8 = pneg %p1745_p4 }
  0x2f   : > { %1603 = dma.hbm_to_vmem [thread:$0]  (!%p2150_p6), %s2491_s3, 512, %s405_s22, [#allocation10], %s2460_s28, %s2460_s28, %s2462_s21  }
  0x30   : > { %p1753_p12 = pnand %p1752_p11, %p1746_p8 }
  0x32   : > { %1756 = shalt.err (!%p1753_p12)
}
  0x33   : > { %s2492_s7 = sld [smem:[#allocation34_spill]]  ;;  %s1436_s13 = sadd.s32 4294967294, %s2015_s18  }
  0x34   : > { %s48_s14 = sadd.s32 1, %s2011_s17  ;;  %s57_s22 = sadd.s32 1, %s2003_s15 }
  0x35   : > { %p50_p13 = scmp.ge.s32.totalorder %s48_s14, 2  ;;  %p64_p0 = scmp.ne.s32.totalorder %s2003_s15, %s1999_s30 }
  0x36   : > { %p65_p2 = scmp.eq.s32.totalorder %s2015_s18, 0  ;;  %p70_p8 = scmp.ne.s32.totalorder %s1999_s30, %s1995_s29 }
  0x37   : > { %s2535_s14 = smov (%p50_p13, %s48_s14), 0  ;;  %p379_p9 = scmp.eq.s32.totalorder %s2136_s19, 1 }
  0x38   : > { %2493 = sst [smem:[#allocation27_spill]] %s2535_s14  ;;  %p2188_p4 = por %p65_p2, %p64_p0 }
  0x39   : > { %1609 = dma.hbm_to_vmem [thread:$0]  (!%p2150_p6), %s2492_s7, 512, %s437_s25, [#allocation13], %s2460_s28, %s2460_s28, %s2462_s21  }
  0x3a   : > { %s52_s25 = ssub.s32 %s2011_s17, %s2535_s14  ;;  %p2199_p11 = por %p2473_p1, %p70_p8 }
  0x3b   : > { %p55_p10 = scmp.eq.s32.totalorder %s52_s25, 0  ;;  %p2203_p12 = por %p379_p9, %p64_p0 }
  0x3c   : > { %s2495_s24 = scalar_select %p2199_p11, 1, 0 }
  0x3d   : > { %s2496_s27 = scalar_select %p2203_p12, 1, 0 }
  0x3e   : > { %p385_p13 = scmp.eq.s32.totalorder %s1436_s13, 1  ;;  %p1635_p5 = scmp.lt.s32.totalorder %s2015_s18, 2 }
  0x3f   : > { %2497 = sst [smem:[#allocation28_spill]] %s2496_s27  ;;  %s2470_s3 = sand.u32 1, %s2003_s15  }
  0x40   : > { %s2208_s28 = scalar_select %p55_p10, %s2003_s15, %s57_s22  }
  0x41   : > { %p2210_p2 = por %p385_p13, %p70_p8  ;;  %s2217_s7 = sshll.u32 %s2011_s17, 7 }
  0x42   : > { %2498 = sst [smem:[#allocation29_spill]] %s2208_s28  ;;  %s2221_s25 = sshll.u32 %s2470_s3, 3 }
  0x43   : > { %s2499_s21 = scalar_select %p2210_p2, 1, 0 }
  0x44   : > { %p2225_p0 = pnand %p1635_p5, %p2188_p4  ;;  %s507_s13 = sand.u32 1, %s2015_s18  }
  0x45   : > { %2500 = sst [smem:[#allocation30_spill]] %s2499_s21  ;;  %s511_s29 = scalar_lea.vmem [#allocation6], %s2221_s25 }
  0x46   : > { %s2502_s1 = sld [smem:[#allocation31_spill]]  ;;  %s518_s17 = sshll.u32 %s511_s29, 4  ;;  %s519_s17 = int_to_ptr.vmem [resolvable:$true] %s518_s17 }
  0x47   : > { %s2235_s27 = scalar_lea.sflag [#allocation7], %s507_s13  ;;  %p2474_p8 = pneg %p2225_p0 }
  0x48   : > { %s1770_s11 = scalar_lea.vmem %s519_s17, 128  ;;  %s2021_s3 = smov [#allocation6]  }
  0x49   : > { %p1771_p9 = scmp.ne.s32.totalorder %s519_s17, %s1770_s11  ;;  %s1775_s10 = sshll.u32 %s2021_s3, 4  ;;  %s1776_s10 = int_to_ptr.vmem [resolvable:$false] %s1775_s10 }
  0x4a   : > { %s1777_s18 = scalar_lea.vmem %s1776_s10, 256  ;;  %p1778_p10 = scmp.lt.s32.totalorder %s519_s17, %s1776_s10 }
  0x4b   : > { %p1773_p5 = pnand %p1771_p9, %p2474_p8  ;;  %p1779_p13 = scmp.lt.s32.totalorder %s1777_s18, %s1770_s11 }
  0x4c   : > { %s516_s21 = scalar_lea.hbm %s2502_s1, %s2217_s7 }
  0x4d   : > { %p1774_p4 = pneg %p1773_p5  ;;  %p1780_p1 = por %p1779_p13, %p1778_p10 }
  0x4f   : > { %p1781_p2 = pnand %p1780_p1, %p1774_p4 }
  0x51   : > { %1784 = shalt.err (!%p1781_p2)
}
  0x52   : > { %1622 = dma.hbm_to_vmem [thread:$0]  (!%p2225_p0), %s516_s21, 128, %s519_s17, %s2235_s27  }
  0x53   : > { %s2022_s29 = smov [#allocation11]   ;;  %s2023_s13 = smov [#allocation14]  }
  0x54   : > { %s420_s28 = sshll.u32 %s2022_s29, 4  ;;  %s452_s22 = sshll.u32 %s2023_s13, 4  ;;  %s421_s28 = int_to_ptr.vmem [resolvable:$true] %s420_s28  ;;  %s453_s22 = int_to_ptr.vmem [resolvable:$true] %s452_s22 }
  0x55   : > { %s1796_s1 = scalar_lea.vmem %s421_s28, 512  ;;  %p1804_p12 = scmp.lt.s32.totalorder %s421_s28, %s421_s28 }
  0x56   : > { %p1797_p9 = scmp.ne.s32.totalorder %s421_s28, %s1796_s1  ;;  %p1805_p11 = scmp.lt.s32.totalorder %s1796_s1, %s1796_s1 }
  0x58   : > { %p1799_p5 = pnand %p1797_p9, %p2156_p7  ;;  %p1806_p10 = por %p1805_p11, %p1804_p12 }
  0x5a   : > { %p1800_p8 = pneg %p1799_p5 }
  0x5c   : > { %p1807_p1 = pnand %p1806_p10, %p1800_p8 }
  0x5e   : > { %1810 = shalt.err (!%p1807_p1)
}
  0x5f   : > { %s2503_s3 = smov 8   ;;  %s2504_s10 = smov 128  }
  0x60   : > { %s2505_s5 = sld [smem:[#allocation33_spill]]  ;;  %s1822_s21 = scalar_lea.vmem %s453_s22, 512 }
  0x61   : > { %p1823_p2 = scmp.ne.s32.totalorder %s453_s22, %s1822_s21  ;;  %p1830_p9 = scmp.lt.s32.totalorder %s453_s22, %s453_s22 }
  0x62   : > { %p1831_p11 = scmp.lt.s32.totalorder %s1822_s21, %s1822_s21 }
  0x63   : > { %p1825_p4 = pnand %p1823_p2, %p2156_p7 }
  0x64   : > { %p1832_p12 = por %p1831_p11, %p1830_p9 }
  0x65   : > { %p1826_p13 = pneg %p1825_p4 }
  0x66   : > { %1606 = dma.hbm_to_vmem [thread:$0]  (!%p2150_p6), %s2505_s5, 512, %s421_s28, [#allocation10], %s2504_s10, %s2504_s10, %s2503_s3  }
  0x67   : > { %p1833_p8 = pnand %p1832_p12, %p1826_p13 }
  0x69   : > { %1836 = shalt.err (!%p1833_p8)
}
  0x6a   : > { %1612 = dma.hbm_to_vmem [thread:$0]  (!%p2150_p6), %s2453_s9, 512, %s453_s22, [#allocation13], %s2504_s10, %s2504_s10, %s2503_s3  }
  0x6b   : > { %s2024_s29 = smov [#allocation15]  }
  0x6c   : > { %s471_s28 = sshll.u32 %s2024_s29, 4  ;;  %s472_s28 = int_to_ptr.vmem [resolvable:$true] %s471_s28 }
  0x6d   : > { %s1848_s13 = scalar_lea.vmem %s472_s28, 512  ;;  %p1856_p2 = scmp.lt.s32.totalorder %s472_s28, %s472_s28 }
  0x6e   : > { %p1849_p5 = scmp.ne.s32.totalorder %s472_s28, %s1848_s13  ;;  %p1857_p4 = scmp.lt.s32.totalorder %s1848_s13, %s1848_s13 }
  0x70   : > { %p1851_p10 = pnand %p1849_p5, %p2156_p7  ;;  %p1858_p13 = por %p1857_p4, %p1856_p2 }
  0x72   : > { %p1852_p1 = pneg %p1851_p10 }
  0x74   : > { %p1859_p9 = pnand %p1858_p13, %p1852_p1 }
  0x76   : > { %1862 = shalt.err (!%p1859_p9)
}
  0x77   : > { %1615 = dma.hbm_to_vmem [thread:$0]  (!%p2150_p6), %s2456_s12, 512, %s472_s28, [#allocation16], %s2504_s10, %s2504_s10, %s2503_s3  }
  0x78   : > { %s498_s21 = scalar_lea.hbm %s2444_s0, %s2217_s7  ;;  %s492_s1 = scalar_lea.vmem [#allocation3], %s2221_s25 }
  0x79   : > { %s500_s11 = sshll.u32 %s492_s1, 4  ;;  %s2506_s29 = sand.u32 1, %s2003_s15   ;;  %s501_s11 = int_to_ptr.vmem [resolvable:$true] %s500_s11 }
  0x7a   : > { %s489_s23 = scalar_lea.sflag [#allocation4], %s2506_s29  ;;  %s1876_s13 = scalar_lea.vmem %s501_s11, 128 }
  0x7b   : > { %p1877_p7 = scmp.ne.s32.totalorder %s501_s11, %s1876_s13  ;;  %p2507_p11 = pneg %p2225_p0 }
  0x7c   : > { %s2025_s17 = smov [#allocation3]  }
  0x7d   : > { %p1879_p12 = pnand %p1877_p7, %p2507_p11  ;;  %s1881_s22 = sshll.u32 %s2025_s17, 4  ;;  %s1882_s22 = int_to_ptr.vmem [resolvable:$false] %s1881_s22 }
  0x7e   : > { %s1883_s5 = scalar_lea.vmem %s1882_s22, 256  ;;  %p1884_p6 = scmp.lt.s32.totalorder %s501_s11, %s1882_s22 }
  0x7f   : > { %p1880_p8 = pneg %p1879_p12  ;;  %p1885_p5 = scmp.lt.s32.totalorder %s1883_s5, %s1876_s13 }
  0x81   : > { %p1886_p10 = por %p1885_p5, %p1884_p6 }
  0x83   : > { %p1887_p1 = pnand %p1886_p10, %p1880_p8 }
  0x85   : > { %1890 = shalt.err (!%p1887_p1)
}
  0x86   : > { %1619 = dma.hbm_to_vmem [thread:$0]  (!%p2225_p0), %s498_s21, 128, %s501_s11, %s489_s23  }
  0x87   : > { %s534_s28 = scalar_lea.hbm %s2446_s2, %s2217_s7  ;;  %s529_s26 = scalar_lea.vmem [#allocation8], %s2221_s25 }
  0x88   : > { %s536_s18 = sshll.u32 %s529_s26, 4  ;;  %p2508_p4 = pmov %p2507_p11  ;;  %s537_s18 = int_to_ptr.vmem [resolvable:$true] %s536_s18 }
  0x89   : > { %s1904_s1 = scalar_lea.vmem %s537_s18, 128  ;;  %s2026_s5 = smov [#allocation8]  }
  0x8a   : > { %p1905_p2 = scmp.ne.s32.totalorder %s537_s18, %s1904_s1  ;;  %s1909_s29 = sshll.u32 %s2026_s5, 4  ;;  %s1910_s29 = int_to_ptr.vmem [resolvable:$false] %s1909_s29 }
  0x8b   : > { %s1911_s13 = scalar_lea.vmem %s1910_s29, 256  ;;  %p1912_p7 = scmp.lt.s32.totalorder %s537_s18, %s1910_s29 }
  0x8c   : > { %p1907_p13 = pnand %p1905_p2, %p2508_p4  ;;  %p1913_p11 = scmp.lt.s32.totalorder %s1911_s13, %s1904_s1 }
  0x8e   : > { %p1908_p9 = pneg %p1907_p13  ;;  %p1914_p12 = por %p1913_p11, %p1912_p7 }
  0x90   : > { %p1915_p8 = pnand %p1914_p12, %p1908_p9 }
  0x92   : > { %1918 = shalt.err (!%p1915_p8)
}
  0x93   : > { %1625 = dma.hbm_to_vmem [thread:$0]  (!%p2225_p0), %s534_s28, 128, %s537_s18, %s2235_s27  }
  0x94   : > { %545 = sbr.rel (%p2141_p3) target bundleno = 1448 (0x5a8), region = 76  ;;  %s2301_s7 = sand.u32 (!%p2141_p3), 1, %s1999_s30  }
  0x95   : > { %s2304_s25 = sshll.u32 (!%p2141_p3), %s2301_s7, 3  ;;  %s548_s21 = scalar_lea.sflag (!%p2141_p3), [#allocation4], %s2301_s7 }
  0x96   : > { %s551_s11 = scalar_lea.vmem (!%p2141_p3), [#allocation3], %s2304_s25  ;;  %p2509_p6 = scmp.ne.s32.totalorder (!%p2141_p3), %s2495_s24, 0 }
  0x99   : > { %1970 = dma.done.wait (%p2509_p6), %s548_s21, 128  }
  0x9a   : > { %1972 = vsyncadd (%p2509_p6), %s548_s21, 4294967168  ;;  %s556_s20 = sand.u32 1, %s2136_s19   ;;  %s560_s27 = scalar_lea.vmem [#allocation6], %s2304_s25 }
  0x9b   : > { %s557_s14 = scalar_lea.sflag [#allocation7], %s556_s20 }
  0x9c   : > { %1974 = dma.done.wait (%p2509_p6), %s557_s14, 256  }
  0x9d   : > { %1976 = vsyncadd (%p2509_p6), %s557_s14, 4294967040  ;;  %s569_s23 = scalar_lea.vmem [#allocation8], %s2304_s25  ;;  %p2510_p3 = scmp.eq.s32.totalorder %s2136_s19, 0 }
  0x9f   : > { %1978 = dma.done.wait (%p2510_p3), [#allocation10], 1024   ;;  %p2511_p0 = pmov %p2510_p3 }
  0xa1   : > { %1980 = vsyncadd (%p2511_p0), [#allocation10], 4294966272  ;;  %p2512_p5 = pmov %p2511_p0 }
  0xa2   : > { %p2513_p10 = pmov %p2511_p0 }
  0xa3   : > { %1982 = dma.done.wait (%p2512_p5), [#allocation13], 1024  }
  0xa4   : > { %1984 = vsyncadd (%p2513_p10), [#allocation13], 4294966272  ;;  %p2514_p1 = pmov %p2511_p0 }
  0xa5   : > { %p2515_p2 = pmov %p2511_p0 }
  0xa6   : > { %1986 = dma.done.wait (%p2514_p1), [#allocation16], 512  }
  0xa7   : > { %1988 = vsyncadd (%p2515_p2), [#allocation16], 4294966784  ;;  %v2027_v0 = vmov 0.0   ;;  %vm2028_vm0 = vmmov 0   ;;  %v653_v1 = vld [vmem:[#allocation11 + $0x18] sm:$0xff]  ;;  %v652_v2 = vld [vmem:[#allocation11 + $0x10] sm:$0xff] }
  0xa8   : > { %1509 = vmatprep.subr.mxu0 %v2027_v0  ;;  %1517 = vmatprep.mubr.msk.f32.mxu0 %vm2028_vm0, %v2027_v0  ;;  %v743_v3 = vld [vmem:[#allocation12 + $0x18] sm:$0xff]  ;;  %v651_v4 = vld [vmem:[#allocation11 + $0x8] sm:$0xff]  ;;  %v742_v5 = vld [vmem:[#allocation12 + $0x10] sm:$0xff]  ;;  %vm661_vm1 = vcmask 261120   ;;  %vm856_vm2 = vcmask 64512   ;;  %s2516_s18 = sld [smem:[#allocation35_spill]] }
  0xa9   : > { %1520 = vmatprep.subr.mxu1 %v2027_v0  ;;  %1528 = vmatprep.mubr.msk.f32.mxu1 %vm2028_vm0, %v2027_v0  ;;  %v741_v6 = vld [vmem:[#allocation12 + $0x8] sm:$0xff]  ;;  %v650_v7 = vld [vmem:[#allocation11] sm:$0xff]  ;;  %v649_v10 = vld [vmem:[%s569_s23] sm:$0xff]  ;;  %s2517_s29 = sld [smem:[#allocation36_spill]]  ;;  %s1476_s14 = sshll.u32 %s2007_s16, 7 }
  0xaa   : > { %1510 = vmatpush3.msra.mxu0 %v653_v1  ;;  %1521 = vmatpush3.msra.mxu1 %v743_v3  ;;  %v648_v8 = vld [vmem:[%s560_s27] sm:$0xff]  ;;  %v970_v11 = vld [vmem:[#allocation9 + $0x18] sm:$0xff]  ;;  %v969_v12 = vld [vmem:[#allocation9 + $0x10] sm:$0xff]  ;;  %s2518_s13 = sld [smem:[#allocation28_spill]]  ;;  %s643_s27 = scalar_lea.vmem [#allocation17], %s2304_s25 }
  0xab   : > { %1511 = vmatprep.subr.mxu0 %v2027_v0  ;;  %1522 = vmatprep.subr.mxu1 %v2027_v0  ;;  %v740_v9 = vld [vmem:[#allocation12] sm:$0xff]  ;;  %v968_v13 = vld [vmem:[#allocation9 + $0x8] sm:$0xff]  ;;  %v966_v15 = vld [vmem:[%s551_s11] sm:$0xff]  ;;  %s2519_s20 = sld [smem:[#allocation37_spill]]  ;;  %s1264_s23 = sshll.u32 %s643_s27, 4  ;;  %s1265_s23 = int_to_ptr.vmem [resolvable:$true] %s1264_s23 }
  0xac   : > { %1512 = vmatpush3.msra.mxu0 %v652_v2  ;;  %1523 = vmatpush3.msra.mxu1 %v742_v5  ;;  %v967_v14 = vld [vmem:[#allocation9] sm:$0xff]  ;;  %v1460_v16 = vld [vmem:[%s2450_s6] ss:$0 sm:$0xff]  ;;  %v955_v37 = vld [vmem:[#allocation14 + $0x8] sm:$0xff]  ;;  %s2520_s17 = sld [smem:[#allocation38_spill]]  ;;  %s1250_s10 = scalar_lea.sflag [#allocation5], %s2301_s7 }
  0xad   : > { %1513 = vmatprep.subr.mxu0 %v2027_v0  ;;  %1524 = vmatprep.subr.mxu1 %v2027_v0  ;;  %v1462_v17 = vld [vmem:[%s2452_s8] ss:$0 sm:$0xff]  ;;  %v954_v40 = vld [vmem:[#allocation14] sm:$0xff]  ;;  %v957_v44 = vld [vmem:[#allocation14 + $0x18] sm:$0xff]  ;;  %s1919_s28 = scalar_lea.vmem %s1265_s23, 128  ;;  %s2029_s16 = smov [#allocation17]  }
  0xae   : > { %1514 = vmatpush3.msra.mxu0 %v651_v4  ;;  %1525 = vmatpush3.msra.mxu1 %v741_v6  ;;  %v1468_v35 = vld [vmem:[%s2448_s4] ss:$0 sm:$0xff]  ;;  %v1167_v3 = vld [vmem:[#allocation15 + $0x18] sm:$0xff]  ;;  %v1165_v5 = vld [vmem:[#allocation15 + $0x8] sm:$0xff]  ;;  %p1920_p4 = scmp.ne.s32.totalorder %s1265_s23, %s1919_s28  ;;  %s1923_s25 = sshll.u32 %s2029_s16, 4  ;;  %s1924_s25 = int_to_ptr.vmem [resolvable:$false] %s1923_s25 }
  0xaf   : > { %1515 = vmatprep.subr.mxu0 %v2027_v0  ;;  %1526 = vmatprep.subr.mxu1 %v2027_v0  ;;  %v956_v46 = vld [vmem:[#allocation14 + $0x10] sm:$0xff]  ;;  %v1164_v6 = vld [vmem:[#allocation15] sm:$0xff]  ;;  %s1925_s26 = scalar_lea.vmem %s1924_s25, 256  ;;  %p1926_p11 = scmp.lt.s32.totalorder %s1265_s23, %s1924_s25 }
  0xb0   : > { %1516 = vmatpush3.msra.mxu0 %v650_v7  ;;  %1527 = vmatpush3.msra.mxu1 %v740_v9  ;;  %v1166_v4 = vld [vmem:[#allocation15 + $0x10] sm:$0xff]  ;;  %p2522_p13 = scmp.ne.s32.totalorder %s2518_s13, 0  ;;  %p1927_p12 = scmp.lt.s32.totalorder %s1925_s26, %s1919_s28 }
  0xb1   : > { %1518 = vmatmul.mubr.msk.f32.vlgmr.msra.gmra.mxu0 %vm661_vm1, %v648_v8  ;;  %1529 = vmatmul.mubr.msk.f32.vlgmr.msra.gmra.mxu1 %vm661_vm1, %v649_v10 }
  0xb2   : > { %1539 = vmatprep.subr.mxu1 %v2027_v0  ;;  %1547 = vmatprep.mubr.msk.f32.mxu1 %vm2028_vm0, %v2027_v0  ;;  %s2521_s22 = smov %s2520_s17  ;;  %s2401_s3 = scalar_lea.hbm %s2520_s17, %s1476_s14 }
  0xb3   : > { %1540 = vmatpush3.msra.mxu1 %v970_v11  ;;  %v1471_v11 = vld [vmem:[%s2516_s18] ss:$0 sm:$0xff]  ;;  %p1921_p9 = pnand %p1920_p4, %p2522_p13  ;;  %p1928_p8 = por %p1927_p12, %p1926_p11 }
  0xb4   : > { %1541 = vmatprep.subr.mxu1 %v2027_v0 }
  0xb5   : > { %1542 = vmatpush3.msra.mxu1 %v969_v12  ;;  %p1922_p7 = pneg %p1921_p9 }
  0xb6   : > { %1543 = vmatprep.subr.mxu1 %v2027_v0 }
  0xb7   : > { %1544 = vmatpush3.msra.mxu1 %v968_v13  ;;  %v1472_v13 = vld [vmem:[%s2517_s29] ss:$0 sm:$0xff]  ;;  %p1929_p6 = pnand %p1928_p8, %p1922_p7 }
  0xb8   : > { %1545 = vmatprep.subr.mxu1 %v2027_v0 }
  0xb9   : > { %1546 = vmatpush3.msra.mxu1 %v967_v14 }
  0xba   : > { %1548 = vmatmul.mubr.msk.f32.vlgmr.msra.gmra.mxu1 %vm661_vm1, %v966_v15  ;;  %1561 = vmatprep.subr.mxu1 %v2027_v0 }
  0xbb   : > { %1569 = vmatprep.mubr.msk.f32.mxu1 %vm2028_vm0, %v2027_v0  ;;  %1562 = vmatpush3.msra.mxu1 %v1167_v3 }
  0xbc   : > { %1563 = vmatprep.subr.mxu1 %v2027_v0 }
  0xbd   : > { %1564 = vmatpush3.msra.mxu1 %v1166_v4 }
  0xbe   : > { %1565 = vmatprep.subr.mxu1 %v2027_v0 }
  0xbf   : > { %1566 = vmatpush3.msra.mxu1 %v1165_v5 }
  0xc0   : > { %1567 = vmatprep.subr.mxu1 %v2027_v0 }
  0xc1   : > { %1568 = vmatpush3.msra.mxu1 %v1164_v6 }
 0x171   : > { %v731_v18 = vpop.f32.mrf.mxu0  ;;  %v820_v20 = vpop.f32.mrf.mxu1 }
 0x172   : > { %v732_v19 = vadd.f32 %v1460_v16, %v731_v18  ;;  %v821_v22 = vadd.f32 %v1462_v17, %v820_v20 }
 0x173   : > { %v1519_v21 = vpop.f32.mrf.mxu0  ;;  %v1530_v24 = vpop.f32.mrf.mxu1 }
 0x174   : > { %v736_v23 = vmul.f32 0.70710677, %v732_v19  ;;  %1531 = vmatprep.subr.mxu0 %v821_v22  ;;  %v735_v26 = vmul.f32 0.5, %v732_v19 }
 0x175   : > { %1532 = vmatpush3.msra.mxu0 %v821_v22 }
 0x176   : > { %1699 = verf.f32 %v736_v23  ;;  %1550 = vmatprep.subr.mxu0 %v2027_v0 }
 0x17a   : > { %v1048_v29 = vpop.f32.mrf.mxu1 }
 0x17b   : > { %v1049_v36 = vadd.f32 %v1468_v35, %v1048_v29 }
 0x17c   : > { %v1549_v30 = vpop.f32.mrf.mxu1 }
 0x17d   : > { %v1053_v38 = vmul.f32 0.70710677, %v1049_v36  ;;  %v1052_v52 = vmul.f32 0.5, %v1049_v36 }
 0x17f   : > { %1701 = verf.f32 %v1053_v38 }
 0x183   : > { %v1700_v25 = vpop.eup %1699 }
 0x184   : > { %v738_v27 = vadd.f32 1.0, %v1700_v25 }
 0x186   : > { %v739_v28 = vmul.f32 %v738_v27, %v735_v26 }
 0x188   : > { %824 = vxpose.xlu0.b32.start.end [1/1] (short) (narrow) %v739_v28, 32 }
 0x18c   : > { %v1702_v50 = vpop.eup %1701 }
 0x18d   : > { %v1055_v53 = vadd.f32 1.0, %v1702_v50 }
 0x18f   : > { %v1056_v56 = vmul.f32 %v1055_v53, %v1052_v52 }
 0x204   : > { %v840_v31 = vpop.trf.xlu0 }
 0x205   : > { %1533 = vmatprep.mubr.msk.f32.mxu0 %vm856_vm2, %v840_v31 }
 0x208   : > { %v841_v32 = vpop.trf.xlu0 }
 0x209   : > { %1534 = vmatmul.mubr.msk.f32.vlgmr.msra.gmra.mxu0 %vm856_vm2, %v841_v32 }
 0x20c   : > { %v842_v33 = vpop.trf.xlu0 }
 0x20d   : > { %1536 = vmatprep.mubr.msk.f32.mxu0 %vm856_vm2, %v842_v33 }
 0x210   : > { %v843_v34 = vpop.trf.xlu0 }
 0x211   : > { %1537 = vmatmul.mubr.msk.f32.gmra.mxu0 %vm856_vm2, %v843_v34 }
 0x212   : > { %1558 = vmatprep.mubr.msk.f32.mxu0 %vm2028_vm0, %v2027_v0 }
 0x2c9   : > { %v1535_v39 = vpop.f32.mrf.mxu0 }
 0x2ca   : > { %v959_v41 = vmul.f32 %v1535_v39, %v955_v37 }
 0x2cb   : > { %v935_v42 = vpop.f32.mrf.mxu0 }
 0x2cc   : > { %963 = vst.msk [vmem:[#allocation2 + $0x8] sm:$0xff] %vm661_vm1, %v959_v41  ;;  %v958_v43 = vmul.f32 %v954_v40, %v935_v42 }
 0x2ce   : > { %962 = vst.msk [vmem:[#allocation2] sm:$0xff] %vm661_vm1, %v958_v43 }
 0x2d1   : > { %v1538_v45 = vpop.f32.mrf.mxu0 }
 0x2d2   : > { %v961_v47 = vmul.f32 %v1538_v45, %v957_v44 }
 0x2d3   : > { %v945_v48 = vpop.f32.mrf.mxu0  ;;  %v1058_v55 = vld [vmem:[#allocation2 + $0x8] sm:$0xff] }
 0x2d4   : > { %965 = vst.msk [vmem:[#allocation2 + $0x18] sm:$0xff] %vm661_vm1, %v961_v47  ;;  %v960_v49 = vmul.f32 %v956_v46, %v945_v48 }
 0x2d5   : > { %v1057_v57 = vld [vmem:[#allocation2] sm:$0xff] }
 0x2d6   : > { %964 = vst.msk [vmem:[#allocation2 + $0x10] sm:$0xff] %vm661_vm1, %v960_v49 }
 0x2db   : > { %v1060_v51 = vld [vmem:[#allocation2 + $0x18] sm:$0xff] }
 0x2dc   : > { %1551 = vmatpush3.msra.mxu0 %v1060_v51 }
 0x2dd   : > { %1552 = vmatprep.subr.mxu0 %v2027_v0  ;;  %v1059_v54 = vld [vmem:[#allocation2 + $0x10] sm:$0xff] }
 0x2de   : > { %1553 = vmatpush3.msra.mxu0 %v1059_v54 }
 0x2df   : > { %1554 = vmatprep.subr.mxu0 %v2027_v0 }
 0x2e0   : > { %1555 = vmatpush3.msra.mxu0 %v1058_v55 }
 0x2e1   : > { %1556 = vmatprep.subr.mxu0 %v2027_v0  ;;  %v1473_v0 = vld [vmem:[%s2519_s20] ss:$0 sm:$0xff] }
 0x2e2   : > { %1557 = vmatpush3.msra.mxu0 %v1057_v57 }
 0x2e3   : > { %1559 = vmatmul.mubr.msk.f32.vlgmr.msra.gmra.mxu0 %vm661_vm1, %v1056_v56 }
 0x3a3   : > { %v1130_v58 = vpop.f32.mrf.mxu0 }
 0x3a4   : > { %v1134_v59 = vsel %vm661_vm1, %v1130_v58, 0.0 }
 0x3a5   : > { %1135 = vadd.xlane.f32.xlu0 %v1134_v59  ;;  %v1560_v60 = vpop.f32.mrf.mxu0 }
 0x42e   : > { %v1136_v61 = vpop.xlane.xlu0 %1135 }
 0x42f   : > { %v1138_v62 = vmul.f32 0.03125, %v1136_v61 }
 0x431   : > { %v1139_v63 = vsub.f32 %v1130_v58, %v1138_v62 }
 0x433   : > { %v1140_v1 = vmul.f32 %v1139_v63, %v1139_v63 }
 0x435   : > { %v1141_v2 = vsel %vm661_vm1, %v1140_v1, 0.0 }
 0x436   : > { %1142 = vadd.xlane.f32.xlu1 %v1141_v2 }
 0x4bf   : > { %v1143_v7 = vpop.xlane.xlu1 %1142 }
 0x4c0   : > { %v1144_v8 = vmul.f32 0.03125, %v1143_v7 }
 0x4c2   : > { %v1145_v9 = vadd.f32 1e-05, %v1144_v8 }
 0x4c4   : > { %1703 = vrsqrt.f32 %v1145_v9 }
 0x4d1   : > { %v1704_v10 = vpop.eup %1703 }
 0x4d2   : > { %v1147_v12 = vmul.f32 %v1704_v10, %v1139_v63 }
 0x4d4   : > { %v1155_v14 = vmul.f32 %v1471_v11, %v1147_v12 }
 0x4d6   : > { %v1163_v15 = vadd.f32 %v1472_v13, %v1155_v14 }
 0x4d8   : > { %1570 = vmatmul.mubr.msk.f32.vlgmr.msra.gmra.mxu1 %vm661_vm1, %v1163_v15 }
 0x598   : > { %v1244_v16 = vpop.f32.mrf.mxu1 }
 0x599   : > { %v1245_v17 = vadd.f32 %v1473_v0, %v1244_v16 }
 0x59a   : > { %v1571_v18 = vpop.f32.mrf.mxu1 }
 0x59b   : > { %1248 = vst.msk [vmem:[%s643_s27] sm:$0xff] %vm661_vm1, %v1245_v17 }
 0x59c   : > { %1932 = shalt.err (!%p1929_p6)
}
 0x59d   : > { %s1933_s18 = scalar_lea.hbm %s2401_s3, 128  ;;  %s1937_s5 = scalar_lea.hbm %s2521_s22, 256 }
 0x59e   : > { %p1934_p3 = scmp.ne.s32.totalorder %s2401_s3, %s1933_s18  ;;  %p1938_p10 = scmp.lt.s32.totalorder %s2401_s3, %s2521_s22 }
 0x59f   : > { %p1939_p1 = scmp.lt.s32.totalorder %s1937_s5, %s1933_s18 }
 0x5a0   : > { %p1935_p0 = pnand %p1934_p3, %p2522_p13 }
 0x5a1   : > { %p1940_p2 = por %p1939_p1, %p1938_p10 }
 0x5a2   : > { %p1936_p5 = pneg %p1935_p0 }
 0x5a4   : > { %p1941_p4 = pnand %p1940_p2, %p1936_p5 }
 0x5a6   : > { %1944 = shalt.err (!%p1941_p4)
}
 0x5a7   : > { %1598 = dma.vmem_to_hbm [thread:$0]  (%p2522_p13), %s1265_s23, 128, %s2401_s3, %s1250_s10  }
 0x5a8 PF: > { %s2523_s11 = sld [smem:[#allocation24_spill]] }
 0x5a9   : > { %s2524_s20 = sld [smem:[#allocation30_spill]] }
 0x5aa   : > { %s2525_s14 = sld [smem:[#allocation26_spill]] }
 0x5ae   : > { %s1276_s27 = sand.u32 1, %s2523_s11  }
 0x5af   : > { %p2526_p9 = scmp.ne.s32.totalorder %s2524_s20, 0  ;;  %s1277_s19 = scalar_lea.sflag [#allocation5], %s1276_s27 }
 0x5b0   : > { %p2527_p7 = scmp.ge.s32.totalorder %s2525_s14, 2 }
 0x5b2   : > { %p1627_p11 = pnand %p2527_p7, %p2526_p9 }
 0x5b4   : > { %p1628_p12 = pneg %p1627_p11 }
 0x5b6   : > { %1990 = dma.done.wait (%p1628_p12), %s1277_s19, 128  }
 0x5b7   : > { %1992 = vsyncadd (%p1628_p12), %s1277_s19, 4294967168  ;;  %s36_s18 = sadd.s32 1, %s2525_s14   ;;  %s2528_s13 = sld [smem:[#allocation29_spill]] }
 0x5b8   : > { %p33_p8 = scmp.ge.s32.totalorder %s36_s18, 4   ;;  %s2529_s16 = sld [smem:[#allocation25_spill]] }
 0x5b9   : > { %s2530_s17 = sld [smem:[#allocation27_spill]]  ;;  %s2531_s29 = smov %s1999_s30 }
 0x5ba   : > { %s2532_s30 = smov %s2003_s15  ;;  %35 = sbr.rel (!%p33_p8) target bundleno = 20 (0x14), region = 169 }
 0x5bd   : > { %s2533_s15 = smov %s2528_s13 }
 0x5bf   :  { %1282 = vsyncpa [#allocation4], 1 }
 0x5c0   :  { %1284 = vsyncpa [#allocation4 + $0x1], 1 }
 0x5c1   :  { %1285 = vsyncpa [#allocation7], 1 }
 0x5c2   :  { %1287 = vsyncpa [#allocation7 + $0x1], 1 }
 0x5c3   :  { %1288 = vsyncpa [#allocation10], 1 }
 0x5c4   :  { %1289 = vsyncpa [#allocation13], 1 }
 0x5c5   :  { %1290 = vsyncpa [#allocation16], 1 }
 0x5c6   :  { %1291 = vsyncpa [#allocation5], 1 }
 0x5c7   :  { %1293 = vsyncpa [#allocation5 + $0x1], 1 }

</bundles_post_ra>
